<compile_context>
chip_gen: v6e
topology: v6e:2x2x1
jax: 0.10.0
libtpu: 0.0.40
codegen_flags: <defaults>
</compile_context>

<pallas_src>
import jax
import jax.numpy as jnp
from jax import lax
from jax.experimental import pallas as pl
from jax.experimental.pallas import tpu as pltpu

BN_EPS = 1e-5


def _mlp_kernel(x_ref, w1_ref, b1_ref, gamma_ref, beta_ref, w2_ref, b2_ref,
                o_ref, h_acc, out_acc):
    # grid = (j: proj tiles, h: hidden tiles, k: K tiles); k varies fastest.
    # x_ref:  (B, TK) bf16     w1_ref: (TK, TH) bf16
    # b1/gamma/beta: (1, TH) f32
    # w2_ref: (TH, TP) bf16    b2_ref: (1, TP) f32
    # o_ref:  (B, TP)          h_acc: (B, TH) f32   out_acc: (B, TP) f32
    h_idx = pl.program_id(1)
    k_idx = pl.program_id(2)
    nh = pl.num_programs(1)
    nk = pl.num_programs(2)

    # ---- Linear 1: accumulate partial products over the K axis ----------
    @pl.when(k_idx == 0)
    def _():
        h_acc[...] = jnp.zeros_like(h_acc)

    h_acc[...] += jnp.dot(x_ref[...], w1_ref[...],
                          preferred_element_type=jnp.float32)

    # ---- zero the Linear-2 accumulator at the start of each proj tile ---
    @pl.when(jnp.logical_and(k_idx == nk - 1, h_idx == 0))
    def _():
        out_acc[...] = jnp.zeros_like(out_acc)

    # ---- epilogue for this hidden tile: bias + BN + ReLU + Linear-2 -----
    @pl.when(k_idx == nk - 1)
    def _():
        h = h_acc[...] + b1_ref[...]
        # BatchNorm1d, training mode.  The full batch is resident in every
        # tile, so per-feature mean / biased variance are exact.
        mean = jnp.mean(h, axis=0, keepdims=True)
        centered = h - mean
        var = jnp.mean(centered * centered, axis=0, keepdims=True)
        # Folded affine: scale = gamma * rsqrt(var+eps); shift = beta - mean*scale
        scale = gamma_ref[...] * lax.rsqrt(var + BN_EPS)
        shift = beta_ref[...] - mean * scale
        act = jnp.maximum(h * scale + shift, 0.0)
        out_acc[...] += jnp.dot(act.astype(w2_ref.dtype), w2_ref[...],
                                preferred_element_type=jnp.float32)

    # ---- final write once per proj tile ----------------------------------
    @pl.when(jnp.logical_and(k_idx == nk - 1, h_idx == nh - 1))
    def _():
        o_ref[...] = (out_acc[...] + b2_ref[...]).astype(o_ref.dtype)


def _pick_tile(n, candidates=(512, 256, 128)):
    """Largest candidate that divides n; fall back to the full dimension."""
    for c in candidates:
        if n % c == 0:
            return c
    return n


def mlp_forward(x, params):
    """x: any shape (B, ...); flattened to (B, dim) like the PyTorch `flatten`."""
    B = x.shape[0]
    x2d = x.reshape(B, -1).astype(jnp.bfloat16)
    dim = x2d.shape[1]

    w1 = params["w1"].astype(jnp.bfloat16)
    w2 = params["w2"].astype(jnp.bfloat16)
    b1 = params["b1"].astype(jnp.float32)
    gamma = params["gamma"].astype(jnp.float32)
    beta = params["beta"].astype(jnp.float32)
    b2 = params["b2"].astype(jnp.float32)

    hidden = w1.shape[1]
    proj = w2.shape[1]

    # Lane-dense output: pad proj to a multiple of 128, slice afterwards.
    proj_p = ((proj + 127) // 128) * 128
    if proj_p != proj:
        w2 = jnp.pad(w2, ((0, 0), (0, proj_p - proj)))
        b2 = jnp.pad(b2, ((0, 0), (0, proj_p - proj)))

    TK = _pick_tile(dim)                       # K tile of Linear-1
    TH = _pick_tile(hidden)                    # hidden tile (BN feature tile)
    TP = _pick_tile(proj_p, candidates=(256, 128))
    n_pj, n_h, n_k = proj_p // TP, hidden // TH, dim // TK
    grid = (n_pj, n_h, n_k)

    # Advisory cost estimate (Linear-1 is recomputed once per proj tile).
    flops = 2 * B * dim * hidden * n_pj + 2 * B * hidden * proj_p
    bytes_accessed = (
        x2d.size * 2 * n_pj + w1.size * 2 * n_pj + w2.size * 2
        + (b1.size + gamma.size + beta.size + b2.size) * 4
        + B * proj_p * 4
    )
    cost = pl.CostEstimate(flops=flops, transcendentals=hidden,
                           bytes_accessed=bytes_accessed)

    # Double-buffered per-step working set + scratch, with headroom;
    # capped at 64 MiB so the same sizing works on v7x.
    work = (2 * (B * TK * 2 + TK * TH * 2 + 3 * TH * 4 + TH * TP * 2 + TP * 4
                 + B * TP * 4)
            + B * TH * 4 + B * TP * 4)
    vmem_limit = int(min(64 * 1024 * 1024, max(32 * 1024 * 1024, 2 * work)))

    out = pl.pallas_call(
        _mlp_kernel,
        out_shape=jax.ShapeDtypeStruct((B, proj_p), jnp.float32),
        grid_spec=pltpu.PrefetchScalarGridSpec(
            num_scalar_prefetch=0,
            grid=grid,
            in_specs=[
                pl.BlockSpec((B, TK), lambda j, h, k: (0, k)),    # x
                pl.BlockSpec((TK, TH), lambda j, h, k: (k, h)),   # w1
                pl.BlockSpec((1, TH), lambda j, h, k: (0, h)),    # b1
                pl.BlockSpec((1, TH), lambda j, h, k: (0, h)),    # gamma
                pl.BlockSpec((1, TH), lambda j, h, k: (0, h)),    # beta
                pl.BlockSpec((TH, TP), lambda j, h, k: (h, j)),   # w2
                pl.BlockSpec((1, TP), lambda j, h, k: (0, j)),    # b2
            ],
            out_specs=pl.BlockSpec((B, TP), lambda j, h, k: (0, j)),
            scratch_shapes=[
                pltpu.VMEM((B, TH), jnp.float32),   # Linear-1 accumulator
                pltpu.VMEM((B, TP), jnp.float32),   # Linear-2 accumulator
            ],
        ),
        compiler_params=pltpu.CompilerParams(
            dimension_semantics=("parallel", "arbitrary", "arbitrary"),
            vmem_limit_bytes=vmem_limit,
        ),
        cost_estimate=cost,
    )(x2d, w1, b1, gamma, beta, w2, b2)

    return out[:, :proj] if proj_p != proj else out


def init_params(key, dim, projection_size, hidden_size):
    """Deterministic init mimicking PyTorch defaults.

    nn.Linear: U(-1/sqrt(fan_in), 1/sqrt(fan_in)) for weight and bias.
    nn.BatchNorm1d: gamma=1, beta=0.
    Weights stored transposed as (in, out) for the kernel.
    """
    k1, k2, k3, k4 = jax.random.split(key, 4)
    bound1 = 1.0 / jnp.sqrt(dim)
    bound2 = 1.0 / jnp.sqrt(hidden_size)
    return {
        "w1": jax.random.uniform(k1, (dim, hidden_size), jnp.float32, -bound1, bound1),
        "b1": jax.random.uniform(k2, (1, hidden_size), jnp.float32, -bound1, bound1),
        "gamma": jnp.ones((1, hidden_size), jnp.float32),
        "beta": jnp.zeros((1, hidden_size), jnp.float32),
        "w2": jax.random.uniform(k3, (hidden_size, projection_size), jnp.float32, -bound2, bound2),
        "b2": jax.random.uniform(k4, (1, projection_size), jnp.float32, -bound2, bound2),
    }


def mlp_reference(x, params):
    """Pure-JAX reference with the same bf16-operand / f32-accumulate numerics."""
    B = x.shape[0]
    x2d = x.reshape(B, -1).astype(jnp.bfloat16)
    w1 = params["w1"].astype(jnp.bfloat16)
    w2 = params["w2"].astype(jnp.bfloat16)
    h = jnp.dot(x2d, w1, preferred_element_type=jnp.float32) + params["b1"]
    mean = jnp.mean(h, axis=0, keepdims=True)
    var = jnp.mean((h - mean) ** 2, axis=0, keepdims=True)
    hn = (h - mean) * lax.rsqrt(var + BN_EPS) * params["gamma"] + params["beta"]
    hn = jnp.maximum(hn, 0.0)
    return jnp.dot(hn.astype(jnp.bfloat16), w2,
                   preferred_element_type=jnp.float32) + params["b2"]


if __name__ == "__main__":
    key = jax.random.PRNGKey(0)
    k_x, k_p = jax.random.split(key)

    # Small shapes: batch=8, input (8, 4, 4, 8) -> flattened dim=128,
    # hidden=256, projection_size=128.
    B, C, H, W = 8, 4, 4, 8
    dim = C * H * W
    hidden_size = 256
    projection_size = 128

    x = jax.random.normal(k_x, (B, C, H, W), dtype=jnp.float32)
    params = init_params(k_p, dim, projection_size, hidden_size)

    out = mlp_forward(x, params)
    out = jax.block_until_ready(out)

    ref = mlp_reference(x, params)
    assert out.shape == (B, projection_size), out.shape
    assert jnp.allclose(out, ref, atol=2e-2, rtol=2e-2), (
        "mismatch vs JAX reference; max abs diff = "
        f"{float(jnp.max(jnp.abs(out - ref)))}"
    )

    print("KERNEL_OK")
</pallas_src>

<mosaic_0001>
module attributes {stable_mosaic.version = 11 : i64} {
  func.func @_mlp_kernel(%arg0: i32, %arg1: i32, %arg2: i32, %arg3: memref<8x128xbf16, #tpu.memory_space<vmem>>, %arg4: memref<128x256xbf16, #tpu.memory_space<vmem>>, %arg5: memref<1x256xf32, #tpu.memory_space<vmem>>, %arg6: memref<1x256xf32, #tpu.memory_space<vmem>>, %arg7: memref<1x256xf32, #tpu.memory_space<vmem>>, %arg8: memref<256x128xbf16, #tpu.memory_space<vmem>>, %arg9: memref<1x128xf32, #tpu.memory_space<vmem>>, %arg10: memref<8x128xf32, #tpu.memory_space<vmem>>, %arg11: memref<8x256xf32, #tpu.memory_space<vmem>>, %arg12: memref<8x128xf32, #tpu.memory_space<vmem>>) attributes {dimension_semantics = [#tpu.dimension_semantics<parallel>, #tpu.dimension_semantics<arbitrary>, #tpu.dimension_semantics<arbitrary>], iteration_bounds = array<i64: 1, 1, 1>, scalar_prefetch = 0 : i64, scratch_operands = 2 : i64, tpu.core_type = #tpu.core_type<tc>, window_params = [{transform_indices = @transform_0, window_bounds = array<i64: 8, 128>}, {transform_indices = @transform_1, window_bounds = array<i64: 128, 256>}, {transform_indices = @transform_2, window_bounds = array<i64: 1, 256>}, {transform_indices = @transform_3, window_bounds = array<i64: 1, 256>}, {transform_indices = @transform_4, window_bounds = array<i64: 1, 256>}, {transform_indices = @transform_5, window_bounds = array<i64: 256, 128>}, {transform_indices = @transform_6, window_bounds = array<i64: 1, 128>}, {transform_indices = @transform_7, window_bounds = array<i64: 8, 128>}]} {
    %c0_i32 = arith.constant 0 : i32
    %0 = arith.cmpi eq, %arg2, %c0_i32 : i32
    %1 = arith.extui %0 : i1 to i32
    %c0_i32_0 = arith.constant 0 : i32
    %2 = arith.cmpi ne, %1, %c0_i32_0 : i32
    scf.if %2 {
      %cst_16 = arith.constant 0.000000e+00 : f32
      %22 = vector.broadcast %cst_16 : f32 to vector<8x256xf32>
      %c0_17 = arith.constant 0 : index
      %c0_18 = arith.constant 0 : index
      %23 = vector.load %arg11[%c0_17, %c0_18] : memref<8x256xf32, #tpu.memory_space<vmem>>, vector<8x256xf32>
      tpu.vector_store %arg11[%c0_17, %c0_18], %22 {strides = array<i32>} : memref<8x256xf32, #tpu.memory_space<vmem>>, vector<8x256xf32>,
    } else {
    }
    %c0 = arith.constant 0 : index
    %c0_1 = arith.constant 0 : index
    %3 = vector.load %arg11[%c0, %c0_1] : memref<8x256xf32, #tpu.memory_space<vmem>>, vector<8x256xf32>
    %c0_2 = arith.constant 0 : index
    %c0_3 = arith.constant 0 : index
    %4 = vector.load %arg3[%c0_2, %c0_3] : memref<8x128xbf16, #tpu.memory_space<vmem>>, vector<8x128xbf16>
    %c0_4 = arith.constant 0 : index
    %c0_5 = arith.constant 0 : index
    %5 = vector.load %arg4[%c0_4, %c0_5] : memref<128x256xbf16, #tpu.memory_space<vmem>>, vector<128x256xbf16>
    %cst = arith.constant dense<0.000000e+00> : vector<8x256xf32>
    %6 = tpu.matmul %4, %5, %cst {dimension_numbers = #tpu.dot_dimension_numbers<[1], [0], [0], [1], [0, 0, 1, 1], [], []>} : vector<8x128xbf16>, vector<128x256xbf16>, vector<8x256xf32> -> vector<8x256xf32>
    %7 = arith.addf %3, %6 : vector<8x256xf32>
    %c0_6 = arith.constant 0 : index
    %c0_7 = arith.constant 0 : index
    %8 = vector.load %arg11[%c0_6, %c0_7] : memref<8x256xf32, #tpu.memory_space<vmem>>, vector<8x256xf32>
    tpu.vector_store %arg11[%c0_6, %c0_7], %7 {strides = array<i32>} : memref<8x256xf32, #tpu.memory_space<vmem>>, vector<8x256xf32>,
    %c0_i32_8 = arith.constant 0 : i32
    %9 = arith.cmpi eq, %arg2, %c0_i32_8 : i32
    %c0_i32_9 = arith.constant 0 : i32
    %10 = arith.cmpi eq, %arg1, %c0_i32_9 : i32
    %11 = arith.andi %9, %10 : i1
    %12 = arith.extui %11 : i1 to i32
    %c0_i32_10 = arith.constant 0 : i32
    %13 = arith.cmpi ne, %12, %c0_i32_10 : i32
    scf.if %13 {
      %cst_16 = arith.constant 0.000000e+00 : f32
      %22 = vector.broadcast %cst_16 : f32 to vector<8x128xf32>
      %c0_17 = arith.constant 0 : index
      %c0_18 = arith.constant 0 : index
      %23 = vector.load %arg12[%c0_17, %c0_18] : memref<8x128xf32, #tpu.memory_space<vmem>>, vector<8x128xf32>
      tpu.vector_store %arg12[%c0_17, %c0_18], %22 {strides = array<i32>} : memref<8x128xf32, #tpu.memory_space<vmem>>, vector<8x128xf32>,
    } else {
    }
    %c0_i32_11 = arith.constant 0 : i32
    %14 = arith.cmpi eq, %arg2, %c0_i32_11 : i32
    %15 = arith.extui %14 : i1 to i32
    %c0_i32_12 = arith.constant 0 : i32
    %16 = arith.cmpi ne, %15, %c0_i32_12 : i32
    scf.if %16 {
      %c0_16 = arith.constant 0 : index
      %c0_17 = arith.constant 0 : index
      %22 = vector.load %arg11[%c0_16, %c0_17] : memref<8x256xf32, #tpu.memory_space<vmem>>, vector<8x256xf32>
      %c0_18 = arith.constant 0 : index
      %c0_19 = arith.constant 0 : index
      %23 = vector.load %arg5[%c0_18, %c0_19] : memref<1x256xf32, #tpu.memory_space<vmem>>, vector<1x256xf32>
      %24 = vector.broadcast %23 : vector<1x256xf32> to vector<8x256xf32>
      %25 = arith.addf %22, %24 : vector<8x256xf32>
      %cst_20 = arith.constant dense<0.000000e+00> : vector<256xf32>
      %26 = vector.multi_reduction <add>, %25, %cst_20 [0] : vector<8x256xf32> to vector<256xf32>
      %27 = vector.shape_cast %26 : vector<256xf32> to vector<1x256xf32>
      %cst_21 = arith.constant 8.000000e+00 : f32
      %28 = vector.broadcast %cst_21 : f32 to vector<1x256xf32>
      %29 = arith.divf %27, %28 : vector<1x256xf32>
      %30 = vector.broadcast %29 : vector<1x256xf32> to vector<8x256xf32>
      %31 = arith.subf %25, %30 : vector<8x256xf32>
      %32 = arith.mulf %31, %31 : vector<8x256xf32>
      %cst_22 = arith.constant dense<0.000000e+00> : vector<256xf32>
      %33 = vector.multi_reduction <add>, %32, %cst_22 [0] : vector<8x256xf32> to vector<256xf32>
      %34 = vector.shape_cast %33 : vector<256xf32> to vector<1x256xf32>
      %cst_23 = arith.constant 8.000000e+00 : f32
      %35 = vector.broadcast %cst_23 : f32 to vector<1x256xf32>
      %36 = arith.divf %34, %35 : vector<1x256xf32>
      %c0_24 = arith.constant 0 : index
      %c0_25 = arith.constant 0 : index
      %37 = vector.load %arg6[%c0_24, %c0_25] : memref<1x256xf32, #tpu.memory_space<vmem>>, vector<1x256xf32>
      %cst_26 = arith.constant 9.99999974E-6 : f32
      %38 = vector.broadcast %cst_26 : f32 to vector<1x256xf32>
      %39 = arith.addf %36, %38 : vector<1x256xf32>
      %40 = math.rsqrt %39 : vector<1x256xf32>
      %41 = arith.mulf %37, %40 : vector<1x256xf32>
      %c0_27 = arith.constant 0 : index
      %c0_28 = arith.constant 0 : index
      %42 = vector.load %arg7[%c0_27, %c0_28] : memref<1x256xf32, #tpu.memory_space<vmem>>, vector<1x256xf32>
      %43 = arith.mulf %29, %41 : vector<1x256xf32>
      %44 = arith.subf %42, %43 : vector<1x256xf32>
      %45 = vector.broadcast %41 : vector<1x256xf32> to vector<8x256xf32>
      %46 = arith.mulf %25, %45 : vector<8x256xf32>
      %47 = vector.broadcast %44 : vector<1x256xf32> to vector<8x256xf32>
      %48 = arith.addf %46, %47 : vector<8x256xf32>
      %cst_29 = arith.constant 0.000000e+00 : f32
      %49 = vector.broadcast %cst_29 : f32 to vector<8x256xf32>
      %50 = arith.maximumf %48, %49 : vector<8x256xf32>
      %c0_30 = arith.constant 0 : index
      %c0_31 = arith.constant 0 : index
      %51 = vector.load %arg12[%c0_30, %c0_31] : memref<8x128xf32, #tpu.memory_space<vmem>>, vector<8x128xf32>
      %52 = arith.truncf %50 : vector<8x256xf32> to vector<8x256xbf16>
      %c0_32 = arith.constant 0 : index
      %c0_33 = arith.constant 0 : index
      %53 = vector.load %arg8[%c0_32, %c0_33] : memref<256x128xbf16, #tpu.memory_space<vmem>>, vector<256x128xbf16>
      %cst_34 = arith.constant dense<0.000000e+00> : vector<8x128xf32>
      %54 = tpu.matmul %52, %53, %cst_34 {dimension_numbers = #tpu.dot_dimension_numbers<[1], [0], [0], [1], [0, 0, 1, 1], [], []>} : vector<8x256xbf16>, vector<256x128xbf16>, vector<8x128xf32> -> vector<8x128xf32>
      %55 = arith.addf %51, %54 : vector<8x128xf32>
      %c0_35 = arith.constant 0 : index
      %c0_36 = arith.constant 0 : index
      %56 = vector.load %arg12[%c0_35, %c0_36] : memref<8x128xf32, #tpu.memory_space<vmem>>, vector<8x128xf32>
      tpu.vector_store %arg12[%c0_35, %c0_36], %55 {strides = array<i32>} : memref<8x128xf32, #tpu.memory_space<vmem>>, vector<8x128xf32>,
    } else {
    }
    %c0_i32_13 = arith.constant 0 : i32
    %17 = arith.cmpi eq, %arg2, %c0_i32_13 : i32
    %c0_i32_14 = arith.constant 0 : i32
    %18 = arith.cmpi eq, %arg1, %c0_i32_14 : i32
    %19 = arith.andi %17, %18 : i1
    %20 = arith.extui %19 : i1 to i32
    %c0_i32_15 = arith.constant 0 : i32
    %21 = arith.cmpi ne, %20, %c0_i32_15 : i32
    scf.if %21 {
      %c0_16 = arith.constant 0 : index
      %c0_17 = arith.constant 0 : index
      %22 = vector.load %arg12[%c0_16, %c0_17] : memref<8x128xf32, #tpu.memory_space<vmem>>, vector<8x128xf32>
      %c0_18 = arith.constant 0 : index
      %c0_19 = arith.constant 0 : index
      %23 = vector.load %arg9[%c0_18, %c0_19] : memref<1x128xf32, #tpu.memory_space<vmem>>, vector<1x128xf32>
      %24 = vector.broadcast %23 : vector<1x128xf32> to vector<8x128xf32>
      %25 = arith.addf %22, %24 : vector<8x128xf32>
      %c0_20 = arith.constant 0 : index
      %c0_21 = arith.constant 0 : index
      %26 = vector.load %arg10[%c0_20, %c0_21] : memref<8x128xf32, #tpu.memory_space<vmem>>, vector<8x128xf32>
      tpu.vector_store %arg10[%c0_20, %c0_21], %25 {strides = array<i32>} : memref<8x128xf32, #tpu.memory_space<vmem>>, vector<8x128xf32>,
    } else {
    }
    return
  }
  func.func @transform_0(%arg0: i32, %arg1: i32, %arg2: i32) -> (i32, i32) {
    %c0_i32 = arith.constant 0 : i32
    %c0_i32_0 = arith.constant 0 : i32
    return %c0_i32, %arg2 : i32, i32
  }
  func.func @transform_1(%arg0: i32, %arg1: i32, %arg2: i32) -> (i32, i32) {
    %c0_i32 = arith.constant 0 : i32
    return %arg2, %arg1 : i32, i32
  }
  func.func @transform_2(%arg0: i32, %arg1: i32, %arg2: i32) -> (i32, i32) {
    %c0_i32 = arith.constant 0 : i32
    %c0_i32_0 = arith.constant 0 : i32
    return %c0_i32, %arg1 : i32, i32
  }
  func.func @transform_3(%arg0: i32, %arg1: i32, %arg2: i32) -> (i32, i32) {
    %c0_i32 = arith.constant 0 : i32
    %c0_i32_0 = arith.constant 0 : i32
    return %c0_i32, %arg1 : i32, i32
  }
  func.func @transform_4(%arg0: i32, %arg1: i32, %arg2: i32) -> (i32, i32) {
    %c0_i32 = arith.constant 0 : i32
    %c0_i32_0 = arith.constant 0 : i32
    return %c0_i32, %arg1 : i32, i32
  }
  func.func @transform_5(%arg0: i32, %arg1: i32, %arg2: i32) -> (i32, i32) {
    %c0_i32 = arith.constant 0 : i32
    return %arg1, %arg0 : i32, i32
  }
  func.func @transform_6(%arg0: i32, %arg1: i32, %arg2: i32) -> (i32, i32) {
    %c0_i32 = arith.constant 0 : i32
    %c0_i32_0 = arith.constant 0 : i32
    return %c0_i32, %arg0 : i32, i32
  }
  func.func @transform_7(%arg0: i32, %arg1: i32, %arg2: i32) -> (i32, i32) {
    %c0_i32 = arith.constant 0 : i32
    %c0_i32_0 = arith.constant 0 : i32
    return %c0_i32, %arg0 : i32, i32
  }
}

</mosaic_0001>

<bundles_post_ra>
// kernel: tpu_custom_call.1
= control target key start
LH: loop header
LB: loop body
LE: loop exit
PB: predicated region body
PF: predicated region fallthrough
CT: control target
= control target key end

     0   :  { %12 = vsyncpa [#allocation5], 0  ;;  %s835_s0 = inlined_call_operand.hbm [shape: bf16[8,128], index: 0, kind: input, shape index: {}]   ;;  %s836_s1 = inlined_call_operand.hbm [shape: bf16[128,256], index: 1, kind: input, shape index: {}]   ;;  %s837_s2 = inlined_call_operand.vmem [shape: f32[1,256], index: 2, kind: input, shape index: {}]   ;;  %s838_s3 = inlined_call_operand.vmem [shape: f32[1,256], index: 3, kind: input, shape index: {}]   ;;  %s839_s4 = inlined_call_operand.vmem [shape: f32[1,256], index: 4, kind: input, shape index: {}]   ;;  %s840_s5 = inlined_call_operand.hbm [shape: bf16[256,128], index: 5, kind: input, shape index: {}]   ;;  %s841_s6 = inlined_call_operand.vmem [shape: f32[1,128], index: 6, kind: input, shape index: {}]   ;;  %s842_s7 = inlined_call_operand.hbm [shape: f32[8,128], index: 7, kind: output, shape index: {}]  }
   0x1   :  { %13 = vsyncpa [#allocation8], 0 }
   0x2   :  { %14 = vsyncpa [#allocation6], 0  ;;  %s745_s24 = smov [#allocation7]  }
   0x3   :  { %s30_s25 = sshll.u32 %s745_s24, 4  ;;  %s31_s25 = int_to_ptr.vmem [resolvable:$true] %s30_s25 }
   0x4   :  { %s667_s26 = scalar_lea.vmem %s31_s25, 2048  ;;  %p672_p1 = scmp.lt.s32.totalorder %s31_s25, %s31_s25 }
   0x5   :  { %p668_p0 = scmp.ne.s32.totalorder %s31_s25, %s667_s26  ;;  %p673_p2 = scmp.lt.s32.totalorder %s667_s26, %s667_s26 }
   0x7   :  { %p674_p3 = por %p673_p2, %p672_p1 }
   0x9   :  { %p675_p4 = pnand %p674_p3, %p668_p0 }
   0xb   :  { %678 = shalt.err (!%p675_p4)
}
   0xc   :  { %s746_s27 = smov 128   ;;  %s747_s28 = smov 8  }
   0xd   :  { %36 = dma.hbm_to_vmem [thread:$0]  %s836_s1, 2048, %s31_s25, [#allocation8], %s746_s27, %s746_s27, %s747_s28  }
   0xe   :  { %s748_s8 = smov [#allocation4]   ;;  %s749_s10 = smov [#allocation9]  }
   0xf   :  { %s21_s9 = sshll.u32 %s748_s8, 4  ;;  %s48_s11 = sshll.u32 %s749_s10, 4  ;;  %s22_s9 = int_to_ptr.vmem [resolvable:$true] %s21_s9  ;;  %s49_s11 = int_to_ptr.vmem [resolvable:$true] %s48_s11 }
  0x10   :  { %s687_s12 = scalar_lea.vmem %s22_s9, 64  ;;  %p692_p6 = scmp.lt.s32.totalorder %s22_s9, %s22_s9 }
  0x11   :  { %p688_p5 = scmp.ne.s32.totalorder %s22_s9, %s687_s12  ;;  %p693_p7 = scmp.lt.s32.totalorder %s687_s12, %s687_s12 }
  0x13   :  { %p694_p8 = por %p693_p7, %p692_p6 }
  0x15   :  { %p695_p9 = pnand %p694_p8, %p688_p5 }
  0x17   :  { %698 = shalt.err (!%p695_p9)
}
  0x18   :  { %24 = dma.hbm_to_vmem [thread:$0]  %s835_s0, 64, %s22_s9, [#allocation5]  }
  0x19   :  { %s707_s15 = scalar_lea.vmem %s49_s11, 2048  ;;  %p712_p11 = scmp.lt.s32.totalorder %s49_s11, %s49_s11 }
  0x1a   :  { %p708_p10 = scmp.ne.s32.totalorder %s49_s11, %s707_s15  ;;  %p713_p12 = scmp.lt.s32.totalorder %s707_s15, %s707_s15 }
  0x1c   :  { %p714_p13 = por %p713_p12, %p712_p11 }
  0x1e   :  { %p715_p0 = pnand %p714_p13, %p708_p10 }
  0x20   :  { %718 = shalt.err (!%p715_p0)
}
  0x21   :  { %s750_s1 = smov 64   ;;  %s751_s16 = smov 4  }
  0x22   :  { %54 = dma.hbm_to_vmem [thread:$0]  %s840_s5, 2048, %s49_s11, [#allocation8], %s750_s1, %s750_s1, %s751_s16  }
  0x23   :  { %739 = dma.done.wait [#allocation5], 64  }
  0x24   :  { %740 = vsyncadd [#allocation5], 4294967232 }
  0x25   :  { %741 = dma.done.wait [#allocation8], 4096  }
  0x26   :  { %742 = vsyncadd [#allocation8], 4294963200  ;;  %v752_v0 = vmov 0   ;;  %v615_v1 = vld [vmem:[#allocation7 + $0x74] ss:$8 sps:$4 sm:$0xff]   ;;  %v643_v22 = vld [vmem:[#allocation9 + $0x68] sm:$0xff]   ;;  %v230_v34 = vlaneseq }
  0x27   :  { %204 = vmatprep.mubr.bf16.mxu0 %v752_v0  ;;  %v617_v2 = vld [vmem:[#allocation7 + $0x70] ss:$8 sps:$4 sm:$0xff]   ;;  %172 = vmatprep.subr.bf16.mxu0 %v615_v1  ;;  %v618_v3 = vld [vmem:[#allocation7 + $0x64] ss:$8 sps:$4 sm:$0xff]   ;;  %v620_v4 = vld [vmem:[#allocation7 + $0x60] ss:$8 sps:$4 sm:$0xff]  }
  0x28   :  { %173 = vmatpush1.bf16.msra.mxu0 %v617_v2  ;;  %v621_v5 = vld [vmem:[#allocation7 + $0x54] ss:$8 sps:$4 sm:$0xff]   ;;  %v623_v6 = vld [vmem:[#allocation7 + $0x50] ss:$8 sps:$4 sm:$0xff]   ;;  %v624_v7 = vld [vmem:[#allocation7 + $0x44] ss:$8 sps:$4 sm:$0xff]  }
  0x29   :  { %174 = vmatprep.subr.bf16.mxu0 %v618_v3  ;;  %v626_v8 = vld [vmem:[#allocation7 + $0x40] ss:$8 sps:$4 sm:$0xff]   ;;  %v627_v9 = vld [vmem:[#allocation7 + $0x34] ss:$8 sps:$4 sm:$0xff]   ;;  %v629_v10 = vld [vmem:[#allocation7 + $0x30] ss:$8 sps:$4 sm:$0xff]  }
  0x2a   :  { %v630_v11 = vld [vmem:[#allocation7 + $0x24] ss:$8 sps:$4 sm:$0xff]   ;;  %v632_v12 = vld [vmem:[#allocation7 + $0x20] ss:$8 sps:$4 sm:$0xff]   ;;  %v633_v13 = vld [vmem:[#allocation7 + $0x14] ss:$8 sps:$4 sm:$0xff]  }
  0x2b   :  { %v635_v14 = vld [vmem:[#allocation7 + $0x10] ss:$8 sps:$4 sm:$0xff]   ;;  %v636_v15 = vld [vmem:[#allocation7 + $0x4] ss:$8 sps:$4 sm:$0xff]   ;;  %v638_v16 = vld [vmem:[#allocation7] ss:$8 sps:$4 sm:$0xff]  }
  0x2c   :  { %175 = vmatpush1.bf16.msra.mxu0 %v620_v4  ;;  %v75_v17 = vld [vmem:[#allocation4] sm:$0xf]  ;;  %v641_v20 = vld [vmem:[#allocation9 + $0x70] sm:$0xff]   ;;  %v644_v23 = vld [vmem:[#allocation9 + $0x28] sm:$0xff]   ;;  %v231_v35 = vshrl.u32 %v230_v34, 7  ;;  %s754_s22 = smov [#allocation10]  }
  0x2d   :  { %176 = vmatprep.subr.bf16.mxu0 %v621_v5  ;;  %v639_v18 = vld [vmem:[#allocation9 + $0x78] sm:$0xff]   ;;  %v642_v21 = vld [vmem:[#allocation9 + $0x30] sm:$0xff]   ;;  %v645_v24 = vld [vmem:[#allocation9 + $0x60] sm:$0xff]   ;;  %s540_s23 = sshll.u32 %s754_s22, 4  ;;  %s541_s23 = int_to_ptr.vmem [resolvable:$true] %s540_s23 }
  0x2e   :  { %v640_v19 = vld [vmem:[#allocation9 + $0x38] sm:$0xff]   ;;  %583 = vmatprep.subr.bf16.mxu1 %v639_v18  ;;  %v646_v25 = vld [vmem:[#allocation9 + $0x20] sm:$0xff]   ;;  %v649_v28 = vld [vmem:[#allocation9 + $0x50] sm:$0xff]   ;;  %v804_v36 = vsub.s32 0, %v231_v35  ;;  %v809_v38 = vsub.s32 1, %v231_v35  ;;  %s719_s24 = scalar_lea.vmem %s541_s23, 128  ;;  %p724_p2 = scmp.lt.s32.totalorder %s541_s23, %s541_s23 }
  0x2f   :  { %584 = vmatpush3.bf16.msra.mxu1 %v640_v19  ;;  %v647_v26 = vld [vmem:[#allocation9 + $0x58] sm:$0xff]   ;;  %v650_v29 = vld [vmem:[#allocation9 + $0x10] sm:$0xff]   ;;  %v651_v30 = vld [vmem:[#allocation9 + $0x48] sm:$0xff]   ;;  %p720_p1 = scmp.ne.s32.totalorder %s541_s23, %s719_s24  ;;  %p725_p3 = scmp.lt.s32.totalorder %s719_s24, %s719_s24 }
  0x30   :  { %177 = vmatpush1.bf16.msra.mxu0 %v623_v6  ;;  %585 = vmatprep.subr.bf16.mxu1 %v641_v20  ;;  %v648_v27 = vld [vmem:[#allocation9 + $0x18] sm:$0xff]   ;;  %v652_v31 = vld [vmem:[#allocation9 + $0x8] sm:$0xff]   ;;  %v653_v32 = vld [vmem:[#allocation9 + $0x40] sm:$0xff]  }
  0x31   :  { %178 = vmatprep.subr.bf16.mxu0 %v624_v7  ;;  %v654_v33 = vld [vmem:[#allocation9] sm:$0xff]   ;;  %v228_v37 = vld [vmem:[%s837_s2] sm:$0x3]  ;;  %p726_p4 = por %p725_p3, %p724_p2 }
  0x32   :  { %v233_v39 = vrot.slane %v228_v37, %v804_v36  ;;  %v237_v40 = vrot.slane %v228_v37, %v809_v38  ;;  %v299_v34 = vld [vmem:[%s839_s4] sm:$0x3] }
  0x33   :  { %586 = vmatpush3.bf16.msra.mxu1 %v642_v21  ;;  %p727_p5 = pnand %p726_p4, %p720_p1 }
  0x34   :  { %179 = vmatpush1.bf16.msra.mxu0 %v626_v8  ;;  %587 = vmatprep.subr.bf16.mxu1 %v643_v22 }
  0x35   :  { %180 = vmatprep.subr.bf16.mxu0 %v627_v9 }
  0x37   :  { %588 = vmatpush3.bf16.msra.mxu1 %v644_v23 }
  0x38   :  { %181 = vmatpush1.bf16.msra.mxu0 %v629_v10  ;;  %589 = vmatprep.subr.bf16.mxu1 %v645_v24 }
  0x39   :  { %182 = vmatprep.subr.bf16.mxu0 %v630_v11 }
  0x3b   :  { %590 = vmatpush3.bf16.msra.mxu1 %v646_v25  ;;  %v275_v25 = vld [vmem:[%s838_s3] sm:$0x3] }
  0x3c   :  { %183 = vmatpush1.bf16.msra.mxu0 %v632_v12  ;;  %591 = vmatprep.subr.bf16.mxu1 %v647_v26 }
  0x3d   :  { %184 = vmatprep.subr.bf16.mxu0 %v633_v13 }
  0x3f   :  { %592 = vmatpush3.bf16.msra.mxu1 %v648_v27 }
  0x40   :  { %185 = vmatpush1.bf16.msra.mxu0 %v635_v14  ;;  %593 = vmatprep.subr.bf16.mxu1 %v649_v28 }
  0x41   :  { %186 = vmatprep.subr.bf16.mxu0 %v636_v15 }
  0x43   :  { %594 = vmatpush3.bf16.msra.mxu1 %v650_v29 }
  0x44   :  { %187 = vmatpush1.bf16.msra.mxu0 %v638_v16  ;;  %595 = vmatprep.subr.bf16.mxu1 %v651_v30 }
  0x47   :  { %205 = vmatmul.mubr.bf16.vlgmr.msra.gmra.mxu0 %v75_v17  ;;  %596 = vmatpush3.bf16.msra.mxu1 %v652_v31  ;;  %v753_v17 = vmov 1966171168  }
  0x48   :  { %597 = vmatprep.subr.bf16.mxu1 %v653_v32  ;;  %v284_v18 = vunpack.c.l.s4 %v753_v17 }
  0x4a   :  { %v285_v19 = vunpack.c.0.s8 %v284_v18 }
  0x4b   :  { %598 = vmatpush3.bf16.msra.mxu1 %v654_v33 }
  0x4c   :  { %v288_v21 = vsub.s32 %v285_v19, %v231_v35 }
 0x107   :  { %v206_v41 = vpop.f32.mrf.mxu0 }
 0x108   :  { %v813_v42 = vadd.f32 %v233_v39, %v206_v41 }
 0x109   :  { %v208_v43 = vpop.f32.mrf.mxu0 }
 0x10a   :  { %v242_v44 = vrot.slane %v813_v42, 4  ;;  %v241_v45 = vadd.f32 %v237_v40, %v208_v43 }
 0x10b   :  { %v210_v46 = vpop.f32.mrf.mxu0 }
 0x10c   :  { %v243_v47 = vadd.f32 %v242_v44, %v813_v42  ;;  %v248_v48 = vrot.slane %v241_v45, 4 }
 0x10d   :  { %v211_v49 = vpop.f32.mrf.mxu0 }
 0x10e   :  { %v244_v50 = vrot.slane %v243_v47, 2  ;;  %v249_v51 = vadd.f32 %v248_v48, %v241_v45 }
 0x110   :  { %v245_v52 = vadd.f32 %v244_v50, %v243_v47  ;;  %v250_v53 = vrot.slane %v249_v51, 2 }
 0x112   :  { %v246_v54 = vrot.slane %v245_v52, 1  ;;  %v251_v55 = vadd.f32 %v250_v53, %v249_v51 }
 0x114   :  { %v247_v56 = vadd.f32 %v246_v54, %v245_v52  ;;  %v252_v57 = vrot.slane %v251_v55, 1 }
 0x116   :  { %v255_v58 = vmul.f32 0.125, %v247_v56  ;;  %v253_v59 = vadd.f32 %v252_v57, %v251_v55 }
 0x118   :  { %v257_v60 = vsub.f32 %v813_v42, %v255_v58  ;;  %v256_v61 = vmul.f32 0.125, %v253_v59 }
 0x11a   :  { %v259_v62 = vmul.f32 %v257_v60, %v257_v60  ;;  %v258_v63 = vsub.f32 %v241_v45, %v256_v61 }
 0x11c   :  { %v261_v0 = vrot.slane %v259_v62, 4  ;;  %v260_v1 = vmul.f32 %v258_v63, %v258_v63 }
 0x11e   :  { %v262_v2 = vadd.f32 %v261_v0, %v259_v62  ;;  %v267_v3 = vrot.slane %v260_v1, 4 }
 0x120   :  { %v263_v4 = vrot.slane %v262_v2, 2  ;;  %v268_v5 = vadd.f32 %v267_v3, %v260_v1 }
 0x122   :  { %v264_v6 = vadd.f32 %v263_v4, %v262_v2  ;;  %v269_v7 = vrot.slane %v268_v5, 2 }
 0x124   :  { %v265_v8 = vrot.slane %v264_v6, 1  ;;  %v270_v9 = vadd.f32 %v269_v7, %v268_v5 }
 0x126   :  { %v266_v10 = vadd.f32 %v265_v8, %v264_v6  ;;  %v271_v11 = vrot.slane %v270_v9, 1 }
 0x128   :  { %v273_v12 = vmul.f32 0.125, %v266_v10  ;;  %v272_v13 = vadd.f32 %v271_v11, %v270_v9 }
 0x12a   :  { %v276_v14 = vadd.f32 1e-05, %v273_v12  ;;  %v274_v15 = vmul.f32 0.125, %v272_v13 }
 0x12c   :  { %v277_v16 = vadd.f32 1e-05, %v274_v15  ;;  %655 = vrsqrt.f32 %v276_v14 }
 0x12e   :  { %657 = vrsqrt.f32 %v277_v16 }
 0x139   :  { %v656_v20 = vpop.eup %655 }
 0x13b   :  { %v658_v22 = vpop.eup %657 }
 0x13c   :  { %v282_v23 = vcombine.low %v656_v20, %v658_v22 }
 0x13e   :  { %v289_v24 = vrot.slane %v282_v23, %v288_v21 }
 0x140   :  { %v296_v26 = vrot.slane %v289_v24, %v288_v21 }
 0x142   :  { %v298_v27 = vmul.f32 %v296_v26, %v275_v25 }
 0x144   :  { %v304_v28 = vrot.slane %v298_v27, %v804_v36  ;;  %v308_v29 = vrot.slane %v298_v27, %v809_v38 }
 0x146   :  { %v311_v30 = vmul.f32 %v304_v28, %v255_v58  ;;  %v312_v31 = vmul.f32 %v308_v29, %v256_v61  ;;  %v333_v39 = vmul.f32 %v308_v29, %v241_v45  ;;  %v332_v41 = vmul.f32 %v304_v28, %v813_v42  ;;  %v582_v45 = vld [vmem:[%s841_s6] ss:$0 sm:$0xff] }
 0x148   :  { %v315_v32 = vcombine.low %v311_v30, %v312_v31 }
 0x14a   :  { %v322_v33 = vrot.slane %v315_v32, %v288_v21 }
 0x14c   :  { %v329_v35 = vrot.slane %v322_v33, %v288_v21 }
 0x14e   :  { %v331_v37 = vsub.f32 %v299_v34, %v329_v35 }
 0x150   :  { %v342_v40 = vrot.slane %v331_v37, %v809_v38  ;;  %v338_v43 = vrot.slane %v331_v37, %v804_v36 }
 0x152   :  { %v346_v44 = vadd.f32 %v342_v40, %v333_v39  ;;  %v345_v46 = vadd.f32 %v338_v43, %v332_v41 }
 0x154   :  { %v348_v47 = vmax.f32 %v346_v44, 0.0  ;;  %v347_v48 = vmax.f32 %v345_v46, 0.0 }
 0x156   :  { %v351_v49 = vpack.c.bf16 %v348_v47, %v348_v47  ;;  %v350_v50 = vpack.c.bf16 %v347_v48, %v347_v48 }
 0x158   :  { %512 = vmatprep.mubr.bf16.mxu1 %v351_v49 }
 0x159   :  { %513 = vmatmul.mubr.bf16.vlgmr.msra.gmra.mxu1 %v350_v50 }
 0x219   :  { %v599_v51 = vpop.f32.mrf.mxu1 }
 0x21b   :  { %v600_v52 = vpop.f32.mrf.mxu1 }
 0x21c   :  { %v601_v38 = vadd.f32 %v600_v52, %v599_v51 }
 0x21d   :  { %v602_v42 = vpop.f32.mrf.mxu1 }
 0x21e   :  { %v532_v53 = vadd.f32 %v601_v38, %v582_v45 }
 0x21f   :  { %v603_v36 = vpop.f32.mrf.mxu1 }
 0x220   :  { %533 = vst [vmem:[#allocation10] sm:$0xff] %v532_v53 }
 0x221   :  { %730 = shalt.err (!%p727_p5)
}
 0x222   :  { %543 = dma.vmem_to_hbm [thread:$0]  %s541_s23, 128, %s842_s7, [#allocation6]  }
 0x223   :  { %743 = dma.done.wait [#allocation6], 128  }
 0x224   :  { %744 = vsyncadd [#allocation6], 4294967168 }
 0x225   :  { %547 = vsyncpa [#allocation5], 1 }
 0x226   :  { %548 = vsyncpa [#allocation8], 1 }
 0x227   :  { %549 = vsyncpa [#allocation6], 1 }

</bundles_post_ra>
